<compile_context>
chip_gen: v6e
topology: v6e:2x2x1
jax: 0.10.0
libtpu: 0.0.40
codegen_flags: <defaults>
</compile_context>

<pallas_src>
import jax
import jax.numpy as jnp
from jax.experimental import pallas as pl
from jax.experimental.pallas import tpu as pltpu


def _round_up(x, m):
    return (x + m - 1) // m * m


def _pick_tile_m(M):
    """Largest row tile <= 256 that divides M; prefer >= 2 grid steps (v7x: 2 TCs)."""
    for tm in (256, 128, 64, 32, 16, 8):
        if M % tm == 0 and M // tm >= 2:
            return tm
    for tm in (256, 128, 64, 32, 16, 8):
        if M % tm == 0:
            return tm
    return M


def patch_embed_kernel(p_ref, w_ref, b_ref, o_ref):
    # p_ref: (tm, Kp)  im2col patch rows for this grid step
    # w_ref: (Kp, Ep)  projection weight (grid-invariant, VMEM resident)
    # b_ref: (1, Ep)   projection bias (grid-invariant)
    # o_ref: (tm, Ep)  lane-dense output (Ep multiple of 128 -> full-width stores)
    acc = jnp.dot(p_ref[...], w_ref[...], preferred_element_type=jnp.float32)
    o_ref[...] = (acc + b_ref[...]).astype(o_ref.dtype)


def patch_embed(x, weight, bias, *, patch_size):
    """x: (B, C, H, W) f32. weight: (E, C, ph, pw) (PyTorch Conv2d OIHW layout).
    bias: (E,). Returns (B, num_patches, E), matching proj(x).flatten(2).transpose(1, 2)."""
    B, C, H, W = x.shape
    ph, pw = patch_size
    assert H % ph == 0 and W % pw == 0, "image size must match patch grid"
    E = weight.shape[0]
    gh, gw = H // ph, W // pw
    P = gh * gw
    K = C * ph * pw

    # ---- im2col (layout plumbing only; heavy compute happens in the kernel) ----
    # Per-patch feature ordering is (c, kh, kw), matching the Conv2d weight layout.
    patches = (
        x.reshape(B, C, gh, ph, gw, pw)
        .transpose(0, 2, 4, 1, 3, 5)
        .reshape(B * P, K)
    )
    w = weight.reshape(E, K).T          # (K, E): out = patches @ w + b
    b = bias.reshape(1, E)

    # Pad K to a lane-aligned multiple of 128 (zero rows of w contribute nothing).
    Kp = _round_up(K, 128)
    if Kp != K:
        patches = jnp.pad(patches, ((0, 0), (0, Kp - K)))
        w = jnp.pad(w, ((0, Kp - K), (0, 0)))

    # Pad E to a multiple of 128 for lane-dense (unmasked) output stores.
    Ep = _round_up(E, 128)
    if Ep != E:
        w = jnp.pad(w, ((0, 0), (0, Ep - E)))
        b = jnp.pad(b, ((0, 0), (0, Ep - E)))

    # Flatten batch*patches into one M axis, pad to a sublane multiple, tile rows.
    M = B * P
    Mp = _round_up(M, 8)
    if Mp != M:
        patches = jnp.pad(patches, ((0, Mp - M), (0, 0)))
    tm = _pick_tile_m(Mp)

    out = pl.pallas_call(
        patch_embed_kernel,
        out_shape=jax.ShapeDtypeStruct((Mp, Ep), x.dtype),
        grid=(Mp // tm,),
        in_specs=[
            pl.BlockSpec((tm, Kp), lambda i: (i, 0)),   # patch rows: one tile / step
            pl.BlockSpec((Kp, Ep), lambda i: (0, 0)),   # weight: grid-invariant
            pl.BlockSpec((1, Ep), lambda i: (0, 0)),    # bias: grid-invariant
        ],
        out_specs=pl.BlockSpec((tm, Ep), lambda i: (i, 0)),
        compiler_params=pltpu.CompilerParams(
            dimension_semantics=("parallel",),
        ),
        cost_estimate=pl.CostEstimate(
            flops=2 * Mp * Kp * Ep,
            transcendentals=0,
            bytes_accessed=4 * (Mp * Kp + Kp * Ep + Mp * Ep),
        ),
    )(patches, w, b)

    return out[:M, :E].reshape(B, P, E)


if __name__ == "__main__":
    # Small shapes consistent with the module: img 36x36, patch 9 -> 4x4 = 16 patches,
    # in_channels=3, embed_dim=128 (lane-dense), batch=2.
    B, C, H, W = 2, 3, 36, 36
    ph = pw = 9
    E = 128

    key = jax.random.PRNGKey(0)
    kx, kw, kb = jax.random.split(key, 3)
    x = jax.random.normal(kx, (B, C, H, W), jnp.float32)
    weight = 0.02 * jax.random.normal(kw, (E, C, ph, pw), jnp.float32)
    bias = 0.01 * jax.random.normal(kb, (E,), jnp.float32)

    out = patch_embed(x, weight, bias, patch_size=(ph, pw))
    out = jax.block_until_ready(out)

    num_patches = (H // ph) * (W // pw)
    assert out.shape == (B, num_patches, E), out.shape
    assert bool(jnp.all(jnp.isfinite(out)))

    # Reference: the exact PyTorch forward (strided conv -> flatten -> transpose).
    ref = jax.lax.conv_general_dilated(
        x, weight, window_strides=(ph, pw), padding="VALID",
        dimension_numbers=("NCHW", "OIHW", "NCHW"),
    ) + bias.reshape(1, E, 1, 1)
    ref = ref.reshape(B, E, num_patches).transpose(0, 2, 1)
    assert bool(jnp.allclose(out, ref, atol=1e-4, rtol=1e-4)), float(
        jnp.max(jnp.abs(out - ref))
    )

    print("KERNEL_OK")
</pallas_src>

<mosaic_0001>
module attributes {stable_mosaic.version = 11 : i64} {
  func.func @patch_embed_kernel(%arg0: i32, %arg1: memref<16x256xf32, #tpu.memory_space<vmem>>, %arg2: memref<256x128xf32, #tpu.memory_space<vmem>>, %arg3: memref<1x128xf32, #tpu.memory_space<vmem>>, %arg4: memref<16x128xf32, #tpu.memory_space<vmem>>) attributes {dimension_semantics = [#tpu.dimension_semantics<parallel>], iteration_bounds = array<i64: 2>, scalar_prefetch = 0 : i64, scratch_operands = 0 : i64, tpu.core_type = #tpu.core_type<tc>, window_params = [{transform_indices = @transform_0, window_bounds = array<i64: 16, 256>}, {pipeline_mode = #tpu.pipeline_mode<synchronous>, transform_indices = @transform_1, window_bounds = array<i64: 256, 128>}, {pipeline_mode = #tpu.pipeline_mode<synchronous>, transform_indices = @transform_2, window_bounds = array<i64: 1, 128>}, {transform_indices = @transform_3, window_bounds = array<i64: 16, 128>}]} {
    %c0 = arith.constant 0 : index
    %c0_0 = arith.constant 0 : index
    %0 = vector.load %arg1[%c0, %c0_0] : memref<16x256xf32, #tpu.memory_space<vmem>>, vector<16x256xf32>
    %c0_1 = arith.constant 0 : index
    %c0_2 = arith.constant 0 : index
    %1 = vector.load %arg2[%c0_1, %c0_2] : memref<256x128xf32, #tpu.memory_space<vmem>>, vector<256x128xf32>
    %cst = arith.constant dense<0.000000e+00> : vector<16x128xf32>
    %2 = tpu.matmul %0, %1, %cst {dimension_numbers = #tpu.dot_dimension_numbers<[1], [0], [0], [1], [0, 0, 1, 1], [], []>} : vector<16x256xf32>, vector<256x128xf32>, vector<16x128xf32> -> vector<16x128xf32>
    %c0_3 = arith.constant 0 : index
    %c0_4 = arith.constant 0 : index
    %3 = vector.load %arg3[%c0_3, %c0_4] : memref<1x128xf32, #tpu.memory_space<vmem>>, vector<1x128xf32>
    %4 = vector.broadcast %3 : vector<1x128xf32> to vector<16x128xf32>
    %5 = arith.addf %2, %4 : vector<16x128xf32>
    %c0_5 = arith.constant 0 : index
    %c0_6 = arith.constant 0 : index
    %6 = vector.load %arg4[%c0_5, %c0_6] : memref<16x128xf32, #tpu.memory_space<vmem>>, vector<16x128xf32>
    tpu.vector_store %arg4[%c0_5, %c0_6], %5 {strides = array<i32>} : memref<16x128xf32, #tpu.memory_space<vmem>>, vector<16x128xf32>,
    return
  }
  func.func @transform_0(%arg0: i32) -> (i32, i32) {
    %c0_i32 = arith.constant 0 : i32
    %c0_i32_0 = arith.constant 0 : i32
    return %arg0, %c0_i32 : i32, i32
  }
  func.func @transform_1(%arg0: i32) -> (i32, i32) {
    %c0_i32 = arith.constant 0 : i32
    %c0_i32_0 = arith.constant 0 : i32
    %c0_i32_1 = arith.constant 0 : i32
    return %c0_i32, %c0_i32_0 : i32, i32
  }
  func.func @transform_2(%arg0: i32) -> (i32, i32) {
    %c0_i32 = arith.constant 0 : i32
    %c0_i32_0 = arith.constant 0 : i32
    %c0_i32_1 = arith.constant 0 : i32
    return %c0_i32, %c0_i32_0 : i32, i32
  }
  func.func @transform_3(%arg0: i32) -> (i32, i32) {
    %c0_i32 = arith.constant 0 : i32
    %c0_i32_0 = arith.constant 0 : i32
    return %arg0, %c0_i32 : i32, i32
  }
}

</mosaic_0001>

<bundles_post_ra>
// kernel: tpu_custom_call.1
= control target key start
LH: loop header
LB: loop body
LE: loop exit
PB: predicated region body
PF: predicated region fallthrough
CT: control target
= control target key end

     0   :  { %8 = vsyncpa [#allocation3], 0  ;;  %s918_s0 = inlined_call_operand.hbm [shape: f32[32,256], index: 0, kind: input, shape index: {}]   ;;  %s919_s1 = inlined_call_operand.hbm [shape: f32[256,128], index: 1, kind: input, shape index: {}]   ;;  %s920_s2 = inlined_call_operand.vmem [shape: f32[1,128], index: 2, kind: input, shape index: {}]   ;;  %s921_s3 = inlined_call_operand.hbm [shape: f32[32,128], index: 3, kind: output, shape index: {}]  }
   0x1   :  { %10 = vsyncpa [#allocation3 + $0x1], 0 }
   0x2   :  { %11 = vsyncpa [#allocation6], 0 }
   0x3   :  { %12 = vsyncpa [#allocation4], 0 }
   0x4   :  { %14 = vsyncpa [#allocation4 + $0x1], 0  ;;  %s731_s12 = smov 0   ;;  %s733_s13 = smov 0  }
   0x5   :  { %s735_s14 = smov 0   ;;  %s737_s15 = smov 0  }
   0x6 LB: > { %s752_s16 = sadd.s32 4294967295, %s700_s15   ;;  %s424_s17 = sadd.s32 4294967294, %s700_s15   ;;  %s700_s15 = sphi %s737_s15, %s943_s15   ;;  %s696_s14 = sphi %s735_s14, %s942_s14   ;;  %s692_s13 = sphi %s733_s13, %s941_s13   ;;  %s688_s12 = sphi %s731_s12, %s940_s12  }
   0x7   : > { %p40_p0 = scmp.ne.s32.totalorder %s692_s13, %s688_s12  ;;  %p922_p1 = scmp.eq.s32.totalorder %s752_s16, 0 }
   0x8   : > { %p112_p3 = scmp.eq.s32.totalorder %s424_s17, 1  ;;  %p425_p5 = scmp.ge.s32.totalorder %s700_s15, 1 }
   0x9   : > { %p761_p4 = por %p922_p1, %p40_p0  ;;  %p119_p7 = scmp.lt.s32.totalorder %s700_s15, 3 }
   0xa   : > { %p766_p6 = por %p112_p3, %p40_p0  ;;  %s702_s21 = smov [#allocation5]  }
   0xb   : > { %s926_s18 = scalar_select %p761_p4, 1, 0 }
   0xc   : > { %s927_s19 = scalar_select %p766_p6, 1, 0 }
   0xd   : > { %p771_p8 = pnand %p425_p5, %p119_p7  ;;  %s131_s22 = sshll.u32 %s702_s21, 4  ;;  %s132_s22 = int_to_ptr.vmem [resolvable:$true] %s131_s22 }
   0xe   : > { %s785_s24 = sadd.s32 1, %s700_s15   ;;  %s27_s25 = sadd.s32 1, %s696_s14 }
   0xf   : > { %s928_s20 = scalar_select %p771_p8, 1, 0 }
  0x10   : > { %p523_p9 = pneg %p771_p8  ;;  %s24_s26 = ssub.s32 %s700_s15, %s785_s24 }
  0x11   : > { %s589_s27 = scalar_lea.vmem %s132_s22, 4096  ;;  %p597_p5 = scmp.lt.s32.totalorder %s132_s22, %s132_s22 }
  0x12   : > { %p780_p11 = pnand %p523_p9, %p922_p1  ;;  %p590_p13 = scmp.ne.s32.totalorder %s132_s22, %s589_s27 }
  0x13   : > { %p598_p7 = scmp.lt.s32.totalorder %s589_s27, %s589_s27 }
  0x14   : > { %p580_p12 = pneg %p780_p11 }
  0x15   : > { %p599_p10 = por %p598_p7, %p597_p5 }
  0x16   : > { %p592_p0 = pnand %p590_p13, %p580_p12 }
  0x18   : > { %p593_p3 = pneg %p592_p0 }
  0x1a   : > { %p600_p2 = pnand %p599_p10, %p593_p3 }
  0x1c   : > { %603 = shalt.err (!%p600_p2)
}
  0x1d   : > { %s703_s28 = smov 128   ;;  %s704_s29 = smov 8  }
  0x1e   : > { %526 = dma.hbm_to_vmem [thread:$0]  (!%p780_p11), %s919_s1, 4096, %s132_s22, [#allocation6], %s703_s28, %s703_s28, %s704_s29  }
  0x1f   : > { %p25_p9 = scmp.eq.s32.totalorder %s24_s26, 0  ;;  %p34_p12 = scmp.ne.s32.totalorder %s696_s14, %s692_s13 }
  0x20   : > { %p35_p10 = scmp.eq.s32.totalorder %s700_s15, 0  ;;  %p536_p2 = scmp.lt.s32.totalorder %s700_s15, 2 }
  0x21   : > { %s802_s5 = scalar_select %p25_p9, %s696_s14, %s27_s25  }
  0x22   : > { %p36_p13 = por %p35_p10, %p34_p12  ;;  %p930_p0 = scmp.eq.s32.totalorder %s752_s16, 1 }
  0x23   : > { %s148_s7 = sand.u32 1, %s696_s14   ;;  %s443_s8 = sshll.u32 %s700_s15, 9 }
  0x24   : > { %p806_p3 = por %p930_p0, %p34_p12  ;;  %s428_s9 = sshll.u32 %s148_s7, 5 }
  0x25   : > { %s815_s17 = scalar_lea.hbm %s918_s0, %s443_s8  ;;  %s152_s21 = scalar_lea.vmem [#allocation2], %s428_s9 }
  0x26   : > { %s931_s6 = scalar_select %p806_p3, 1, 0 }
  0x27   : > { %s160_s22 = sshll.u32 %s152_s21, 4  ;;  %p817_p11 = pnand %p536_p2, %p36_p13  ;;  %s821_s22 = int_to_ptr.vmem [resolvable:$true] %s160_s22 }
  0x28   : > { %s823_s25 = scalar_lea.sflag [#allocation3], %s148_s7  ;;  %s604_s26 = scalar_lea.hbm %s815_s17, 512 }
  0x29   : > { %p605_p5 = scmp.ne.s32.totalorder %s815_s17, %s604_s26  ;;  %p606_p7 = pneg %p817_p11 }
  0x2a   : > { %s609_s29 = scalar_lea.hbm %s918_s0, 1024  ;;  %p610_p10 = scmp.lt.s32.totalorder %s815_s17, %s918_s0 }
  0x2b   : > { %p607_p9 = pnand %p606_p7, %p605_p5  ;;  %p611_p2 = scmp.lt.s32.totalorder %s609_s29, %s604_s26 }
  0x2d   : > { %p608_p12 = pneg %p607_p9  ;;  %p612_p13 = por %p611_p2, %p610_p10 }
  0x2f   : > { %p613_p0 = pnand %p612_p13, %p608_p12 }
  0x31   : > { %616 = shalt.err (!%p613_p0)
}
  0x32   : > { %s617_s7 = scalar_lea.vmem %s821_s22, 512  ;;  %s705_s8 = smov [#allocation2]  }
  0x33   : > { %p618_p1 = scmp.ne.s32.totalorder %s821_s22, %s617_s7  ;;  %s622_s9 = sshll.u32 %s705_s8, 4  ;;  %s623_s9 = int_to_ptr.vmem [resolvable:$false] %s622_s9 }
  0x34   : > { %s624_s10 = scalar_lea.vmem %s623_s9, 1024  ;;  %p625_p9 = scmp.lt.s32.totalorder %s821_s22, %s623_s9 }
  0x35   : > { %p620_p6 = pnand %p618_p1, %p606_p7  ;;  %p626_p3 = scmp.lt.s32.totalorder %s624_s10, %s617_s7 }
  0x37   : > { %p621_p5 = pneg %p620_p6  ;;  %p627_p4 = por %p626_p3, %p625_p9 }
  0x39   : > { %p628_p8 = pnand %p627_p4, %p621_p5 }
  0x3b   : > { %631 = shalt.err (!%p628_p8)
}
  0x3c   : > { %s706_s11 = smov 256   ;;  %s707_s21 = smov 16  }
  0x3d   : > { %530 = dma.hbm_to_vmem [thread:$0]  (!%p817_p11), %s815_s17, 512, %s821_s22, %s823_s25, %s706_s11, %s706_s11, %s707_s21  }
  0x3e   : > { %p933_p1 = scmp.ne.s32.totalorder %s928_s20, 0 }
  0x3f   : > { %s847_s26 = sand.u32 (!%p933_p1), 1, %s692_s13   ;;  %p934_p4 = scmp.ne.s32.totalorder (!%p933_p1), %s926_s18, 0 }
  0x40   : > { %172 = sbr.rel (%p933_p1) target bundleno = 320 (0x140), region = 32  ;;  %s433_s27 = sshll.u32 (!%p933_p1), %s847_s26, 5 }
  0x41   : > { %s175_s28 = scalar_lea.sflag (!%p933_p1), [#allocation3], %s847_s26  ;;  %s851_s29 = scalar_lea.vmem (!%p933_p1), [#allocation2], %s433_s27 }
  0x45   : > { %675 = dma.done.wait (%p934_p4), %s175_s28, 512  }
  0x46   : > { %677 = vsyncadd (%p934_p4), %s175_s28, 4294966784  ;;  %p935_p6 = scmp.eq.s32.totalorder %s752_s16, 0 }
  0x48   : > { %679 = dma.done.wait (%p935_p6), [#allocation6], 4096   ;;  %p936_p8 = pmov %p935_p6 }
  0x49   : > { %v242_v0 = vld [vmem:[#allocation5 + $0xf8] sm:$0xff]  ;;  %v241_v2 = vld [vmem:[#allocation5 + $0xf0] sm:$0xff]  ;;  %v240_v4 = vld [vmem:[#allocation5 + $0xe8] sm:$0xff]  ;;  %s435_s18 = sshll.u32 %s847_s26, 4  ;;  %s444_s22 = sshll.u32 %s752_s16, 8 }
  0x4a   : > { %681 = vsyncadd (%p936_p8), [#allocation6], 4294963200  ;;  %v226_v1 = vld [vmem:[#allocation5 + $0x78] sm:$0xff]  ;;  %445 = vmatprep.subr.mxu0 %v242_v0  ;;  %483 = vmatprep.subr.mxu1 %v242_v0  ;;  %v225_v3 = vld [vmem:[#allocation5 + $0x70] sm:$0xff]  ;;  %s204_s20 = scalar_lea.vmem [#allocation7], %s435_s18  ;;  %s875_s7 = scalar_lea.hbm %s921_s3, %s444_s22 }
  0x4b   : > { %446 = vmatpush3.msra.mxu0 %v226_v1  ;;  %499 = vmatpush3.msra.mxu1 %v226_v1  ;;  %v224_v5 = vld [vmem:[#allocation5 + $0x68] sm:$0xff]  ;;  %v239_v6 = vld [vmem:[#allocation5 + $0xe0] sm:$0xff]  ;;  %v238_v8 = vld [vmem:[#allocation5 + $0xd8] sm:$0xff]  ;;  %s341_s17 = sshll.u32 %s204_s20, 4  ;;  %s328_s16 = scalar_lea.sflag [#allocation4], %s847_s26  ;;  %s870_s17 = int_to_ptr.vmem [resolvable:$true] %s341_s17 }
  0x4c   : > { %447 = vmatprep.subr.mxu0 %v241_v2  ;;  %484 = vmatprep.subr.mxu1 %v241_v2  ;;  %v223_v7 = vld [vmem:[#allocation5 + $0x60] sm:$0xff]  ;;  %v222_v9 = vld [vmem:[#allocation5 + $0x58] sm:$0xff]  ;;  %v237_v10 = vld [vmem:[#allocation5 + $0xd0] sm:$0xff]  ;;  %s632_s8 = scalar_lea.vmem %s870_s17, 256  ;;  %p937_p11 = scmp.ne.s32.totalorder %s931_s6, 0 }
  0x4d   : > { %448 = vmatpush3.msra.mxu0 %v225_v3  ;;  %500 = vmatpush3.msra.mxu1 %v225_v3  ;;  %v221_v11 = vld [vmem:[#allocation5 + $0x50] sm:$0xff]  ;;  %v236_v12 = vld [vmem:[#allocation5 + $0xc8] sm:$0xff]  ;;  %v235_v14 = vld [vmem:[#allocation5 + $0xc0] sm:$0xff]  ;;  %p633_p3 = scmp.ne.s32.totalorder %s870_s17, %s632_s8  ;;  %s708_s9 = smov [#allocation7]  }
  0x4e   : > { %449 = vmatprep.subr.mxu0 %v240_v4  ;;  %485 = vmatprep.subr.mxu1 %v240_v4  ;;  %v220_v13 = vld [vmem:[#allocation5 + $0x48] sm:$0xff]  ;;  %v219_v15 = vld [vmem:[#allocation5 + $0x40] sm:$0xff]  ;;  %v234_v16 = vld [vmem:[#allocation5 + $0xb8] sm:$0xff]  ;;  %s636_s10 = sshll.u32 %s708_s9, 4  ;;  %s637_s10 = int_to_ptr.vmem [resolvable:$false] %s636_s10 }
  0x4f   : > { %450 = vmatpush3.msra.mxu0 %v224_v5  ;;  %501 = vmatpush3.msra.mxu1 %v224_v5  ;;  %v218_v17 = vld [vmem:[#allocation5 + $0x38] sm:$0xff]  ;;  %v233_v18 = vld [vmem:[#allocation5 + $0xb0] sm:$0xff]  ;;  %v232_v20 = vld [vmem:[#allocation5 + $0xa8] sm:$0xff]  ;;  %p634_p7 = pnand %p633_p3, %p937_p11  ;;  %s638_s11 = scalar_lea.vmem %s637_s10, 512 }
  0x50   : > { %451 = vmatprep.subr.mxu0 %v239_v6  ;;  %486 = vmatprep.subr.mxu1 %v239_v6  ;;  %v217_v19 = vld [vmem:[#allocation5 + $0x30] sm:$0xff]  ;;  %v216_v21 = vld [vmem:[#allocation5 + $0x28] sm:$0xff]  ;;  %v231_v22 = vld [vmem:[#allocation5 + $0xa0] sm:$0xff]  ;;  %p639_p10 = scmp.lt.s32.totalorder %s870_s17, %s637_s10  ;;  %p640_p2 = scmp.lt.s32.totalorder %s638_s11, %s632_s8 }
  0x51   : > { %452 = vmatpush3.msra.mxu0 %v223_v7  ;;  %502 = vmatpush3.msra.mxu1 %v223_v7  ;;  %v215_v23 = vld [vmem:[#allocation5 + $0x20] sm:$0xff]  ;;  %v230_v24 = vld [vmem:[#allocation5 + $0x98] sm:$0xff]  ;;  %v229_v26 = vld [vmem:[#allocation5 + $0x90] sm:$0xff]  ;;  %p635_p12 = pneg %p634_p7 }
  0x52   : > { %453 = vmatprep.subr.mxu0 %v238_v8  ;;  %487 = vmatprep.subr.mxu1 %v238_v8  ;;  %v214_v25 = vld [vmem:[#allocation5 + $0x18] sm:$0xff]  ;;  %v213_v27 = vld [vmem:[#allocation5 + $0x10] sm:$0xff]  ;;  %v228_v28 = vld [vmem:[#allocation5 + $0x88] sm:$0xff]  ;;  %p641_p13 = por %p640_p2, %p639_p10 }
  0x53   : > { %454 = vmatpush3.msra.mxu0 %v222_v9  ;;  %503 = vmatpush3.msra.mxu1 %v222_v9  ;;  %v212_v29 = vld [vmem:[#allocation5 + $0x8] sm:$0xff]  ;;  %v227_v30 = vld [vmem:[#allocation5 + $0x80] sm:$0xff]  ;;  %v210_v33 = vld [vmem:[%s851_s29 + $0x18] sm:$0xff] }
  0x54   : > { %455 = vmatprep.subr.mxu0 %v237_v10  ;;  %488 = vmatprep.subr.mxu1 %v237_v10  ;;  %v211_v31 = vld [vmem:[#allocation5] sm:$0xff]  ;;  %v208_v32 = vld [vmem:[%s851_s29 + $0x8] sm:$0xff]  ;;  %v209_v35 = vld [vmem:[%s851_s29 + $0x10] sm:$0xff]  ;;  %p642_p0 = pnand %p641_p13, %p635_p12 }
  0x55   : > { %456 = vmatpush3.msra.mxu0 %v221_v11  ;;  %504 = vmatpush3.msra.mxu1 %v221_v11  ;;  %v207_v34 = vld [vmem:[%s851_s29] sm:$0xff] }
  0x56   : > { %457 = vmatprep.subr.mxu0 %v236_v12  ;;  %489 = vmatprep.subr.mxu1 %v236_v12  ;;  %v436_v38 = vld [vmem:[%s920_s2] ss:$0 sm:$0xff] }
  0x57   : > { %458 = vmatpush3.msra.mxu0 %v220_v13  ;;  %505 = vmatpush3.msra.mxu1 %v220_v13 }
  0x58   : > { %459 = vmatprep.subr.mxu0 %v235_v14  ;;  %490 = vmatprep.subr.mxu1 %v235_v14 }
  0x59   : > { %460 = vmatpush3.msra.mxu0 %v219_v15  ;;  %506 = vmatpush3.msra.mxu1 %v219_v15 }
  0x5a   : > { %461 = vmatprep.subr.mxu0 %v234_v16  ;;  %491 = vmatprep.subr.mxu1 %v234_v16 }
  0x5b   : > { %462 = vmatpush3.msra.mxu0 %v218_v17  ;;  %507 = vmatpush3.msra.mxu1 %v218_v17 }
  0x5c   : > { %463 = vmatprep.subr.mxu0 %v233_v18  ;;  %492 = vmatprep.subr.mxu1 %v233_v18 }
  0x5d   : > { %464 = vmatpush3.msra.mxu0 %v217_v19  ;;  %508 = vmatpush3.msra.mxu1 %v217_v19 }
  0x5e   : > { %465 = vmatprep.subr.mxu0 %v232_v20  ;;  %493 = vmatprep.subr.mxu1 %v232_v20 }
  0x5f   : > { %466 = vmatpush3.msra.mxu0 %v216_v21  ;;  %509 = vmatpush3.msra.mxu1 %v216_v21 }
  0x60   : > { %467 = vmatprep.subr.mxu0 %v231_v22  ;;  %494 = vmatprep.subr.mxu1 %v231_v22 }
  0x61   : > { %468 = vmatpush3.msra.mxu0 %v215_v23  ;;  %510 = vmatpush3.msra.mxu1 %v215_v23 }
  0x62   : > { %469 = vmatprep.subr.mxu0 %v230_v24  ;;  %495 = vmatprep.subr.mxu1 %v230_v24 }
  0x63   : > { %470 = vmatpush3.msra.mxu0 %v214_v25  ;;  %511 = vmatpush3.msra.mxu1 %v214_v25 }
  0x64   : > { %471 = vmatprep.subr.mxu0 %v229_v26  ;;  %496 = vmatprep.subr.mxu1 %v229_v26 }
  0x65   : > { %472 = vmatpush3.msra.mxu0 %v213_v27  ;;  %512 = vmatpush3.msra.mxu1 %v213_v27 }
  0x66   : > { %473 = vmatprep.subr.mxu0 %v228_v28  ;;  %497 = vmatprep.subr.mxu1 %v228_v28 }
  0x67   : > { %474 = vmatpush3.msra.mxu0 %v212_v29  ;;  %513 = vmatpush3.msra.mxu1 %v212_v29 }
  0x68   : > { %475 = vmatprep.subr.mxu0 %v227_v30  ;;  %498 = vmatprep.subr.mxu1 %v227_v30 }
  0x69   : > { %476 = vmatpush3.msra.mxu0 %v211_v31  ;;  %514 = vmatpush3.msra.mxu1 %v211_v31 }
  0x6a   : > { %314 = vmatprep.mubr.f32.mxu0 %v208_v32  ;;  %319 = vmatprep.mubr.f32.mxu1 %v210_v33 }
  0x6b   : > { %315 = vmatmul.mubr.f32.vlgmr.msra.gmra.mxu0 %v207_v34  ;;  %320 = vmatmul.mubr.f32.vlgmr.msra.gmra.mxu1 %v209_v35 }
 0x12b   : > { %v477_v36 = vpop.f32.mrf.mxu0  ;;  %v480_v37 = vpop.f32.mrf.mxu1 }
 0x12d   : > { %v478_v39 = vpop.f32.mrf.mxu0  ;;  %v481_v40 = vpop.f32.mrf.mxu1 }
 0x12e   : > { %v479_v41 = vadd.f32 %v478_v39, %v477_v36  ;;  %v482_v42 = vadd.f32 %v481_v40, %v480_v37 }
 0x130   : > { %v317_v43 = vadd.f32 %v479_v41, %v436_v38  ;;  %v322_v44 = vadd.f32 %v482_v42, %v436_v38 }
 0x132   : > { %325 = vst [vmem:[%s204_s20] sm:$0xff] %v317_v43  ;;  %326 = vst [vmem:[%s204_s20 + $0x8] sm:$0xff] %v322_v44 }
 0x133   : > { %645 = shalt.err (!%p642_p0)
}
 0x134   : > { %s646_s21 = scalar_lea.hbm %s875_s7, 256  ;;  %s650_s29 = scalar_lea.hbm %s921_s3, 512 }
 0x135   : > { %p647_p5 = scmp.ne.s32.totalorder %s875_s7, %s646_s21  ;;  %p651_p4 = scmp.lt.s32.totalorder %s875_s7, %s921_s3 }
 0x136   : > { %p652_p6 = scmp.lt.s32.totalorder %s650_s29, %s646_s21 }
 0x137   : > { %p648_p9 = pnand %p647_p5, %p937_p11 }
 0x138   : > { %p653_p8 = por %p652_p6, %p651_p4 }
 0x139   : > { %p649_p1 = pneg %p648_p9 }
 0x13b   : > { %p654_p3 = pnand %p653_p8, %p649_p1 }
 0x13d   : > { %657 = shalt.err (!%p654_p3)
}
 0x13e   : > { %s709_s22 = smov 128   ;;  %s710_s23 = smov 8  }
 0x13f   : > { %521 = dma.vmem_to_hbm [thread:$0]  (%p937_p11), %s870_s17, 256, %s875_s7, %s328_s16, %s709_s22, %s709_s22, %s710_s23  }
 0x140 PF: > { %s356_s25 = sand.u32 1, %s688_s12   ;;  %p938_p7 = scmp.ne.s32.totalorder %s927_s19, 0 }
 0x141   : > { %p939_p12 = scmp.ge.s32.totalorder %s700_s15, 2  ;;  %s357_s30 = scalar_lea.sflag [#allocation4], %s356_s25 }
 0x143   : > { %p532_p10 = pnand %p939_p12, %p938_p7 }
 0x145   : > { %p533_p2 = pneg %p532_p10 }
 0x147   : > { %683 = dma.done.wait (%p533_p2), %s357_s30, 256  }
 0x148   : > { %685 = vsyncadd (%p533_p2), %s357_s30, 4294967040  ;;  %p17_p13 = scmp.ge.s32.totalorder %s785_s24, 4   ;;  %s940_s12 = smov %s692_s13 }
 0x149   : > { %s941_s13 = smov %s696_s14  ;;  %s942_s14 = smov %s802_s5 }
 0x14a   : > { %s943_s15 = smov %s785_s24  ;;  %19 = sbr.rel (!%p17_p13) target bundleno = 6 (0x6), region = 81 }
 0x14f   :  { %362 = vsyncpa [#allocation3], 1 }
 0x150   :  { %364 = vsyncpa [#allocation3 + $0x1], 1 }
 0x151   :  { %365 = vsyncpa [#allocation6], 1 }
 0x152   :  { %366 = vsyncpa [#allocation4], 1 }
 0x153   :  { %368 = vsyncpa [#allocation4 + $0x1], 1 }

</bundles_post_ra>
